<compile_context>
chip_gen: v7x
topology: tpu7x:2x2x1
jax: 0.10.0
libtpu: 0.0.40
codegen_flags: <defaults>
</compile_context>

<pallas_src>
import functools

import jax
import jax.numpy as jnp
from jax.experimental import pallas as pl
from jax.experimental.pallas import tpu as pltpu

LANES = 128
SUBLANES = 8
MAX_BLOCK_ROWS = 4096  # (4096, 128) f32 block = 2 MiB/input/buffer -> 8 MiB total


def _cdiv(a, b):
    return -(-a // b)


def _round_up(a, b):
    return _cdiv(a, b) * b


def _bce_blur_kernel(pred_ref, true_ref, out_ref, *, inv_alpha, n_valid,
                     block_elems, total_tiles):
    c = pl.program_id(0)              # core-split axis ("parallel")
    t = pl.program_id(1)              # tile axis ("arbitrary", reduction)
    nt = pl.num_programs(1)

    # Output block index only depends on c -> block is resident across the
    # t axis and acts as the per-core accumulator.
    @pl.when(t == 0)
    def _init():
        out_ref[...] = jnp.zeros_like(out_ref)

    x = pred_ref[...].astype(jnp.float32)
    y = true_ref[...].astype(jnp.float32)

    # Numerically stable BCE-with-logits (matches torch.nn.BCEWithLogitsLoss):
    #   max(x, 0) - x*y + log1p(exp(-|x|))
    # Reuse e = exp(-|x|) for the sigmoid as well:
    #   sigmoid(x) = where(x >= 0, 1, e) / (1 + e)
    e = jnp.exp(-jnp.abs(x))
    bce = jnp.maximum(x, 0.0) - x * y + jnp.log1p(e)
    # Note: pl.reciprocal(1 + e, approx=True) would shave a few more EUP/VPU
    # ops at a small precision cost; exact division keeps bit-level headroom.
    p = jnp.where(x >= 0.0, 1.0, e) / (1.0 + e)
    dx = p - y
    alpha_factor = 1.0 - jnp.exp((dx - 1.0) * inv_alpha)
    loss = bce * alpha_factor

    def _partial(v):
        # (TR, 128) -> (1, TR//8, 8, 128) -> sum over vreg groups -> (1, 8, 128)
        return jnp.sum(v.reshape(1, -1, SUBLANES, LANES), axis=1)

    first_masked_tile = n_valid // block_elems  # static Python int
    if first_masked_tile < total_tiles:
        # Some padding exists: only tiles at/after first_masked_tile can hold it.
        g = c * nt + t  # global tile index

        @pl.when(g >= first_masked_tile)
        def _masked():
            row = jax.lax.broadcasted_iota(jnp.int32, loss.shape, 0)
            col = jax.lax.broadcasted_iota(jnp.int32, loss.shape, 1)
            lin = row * LANES + col
            remaining = n_valid - g * block_elems  # valid elems in this tile (<=0 ok)
            out_ref[...] += _partial(jnp.where(lin < remaining, loss, 0.0))

        @pl.when(g < first_masked_tile)
        def _unmasked():
            out_ref[...] += _partial(loss)
    else:
        out_ref[...] += _partial(loss)


def bce_blur_with_logits_loss(pred, true, alpha=0.05,
                              max_block_rows=MAX_BLOCK_ROWS):
    """Pallas implementation of BCEBlurWithLogitsLoss.forward. Returns f32 scalar."""
    assert pred.shape == true.shape
    n = pred.size
    assert n > 0

    # Keep native dtype (e.g. bf16) -> halves HBM traffic; cast happens in-kernel.
    flat_p = pred.reshape(-1)
    flat_t = true.reshape(-1)

    rows_needed = _cdiv(n, LANES)
    rows_aligned = _round_up(rows_needed, SUBLANES)
    tr = min(max_block_rows, rows_aligned)           # block rows (multiple of 8)
    num_tiles = _cdiv(rows_aligned, tr)
    nc = 2 if num_tiles >= 2 else 1                  # 2-way split for v7x megacore
    tiles_per_core = _cdiv(num_tiles, nc)
    total_tiles = nc * tiles_per_core
    rows_padded = total_tiles * tr
    assert rows_padded * LANES < 2**31, "int32 tile-offset math would overflow"

    pad = rows_padded * LANES - n
    if pad:  # fast path: skip the full-array pad copy when already tile-aligned
        flat_p = jnp.pad(flat_p, (0, pad))
        flat_t = jnp.pad(flat_t, (0, pad))

    p2 = flat_p.reshape(rows_padded, LANES)
    t2 = flat_t.reshape(rows_padded, LANES)

    block_elems = tr * LANES
    kernel = functools.partial(
        _bce_blur_kernel,
        inv_alpha=float(1.0 / (alpha + 1e-4)),
        n_valid=n,
        block_elems=block_elems,
        total_tiles=total_tiles,
    )

    partials = pl.pallas_call(
        kernel,
        out_shape=jax.ShapeDtypeStruct((nc, SUBLANES, LANES), jnp.float32),
        grid=(nc, tiles_per_core),
        in_specs=[
            pl.BlockSpec((tr, LANES), lambda c, t: (c * tiles_per_core + t, 0)),
            pl.BlockSpec((tr, LANES), lambda c, t: (c * tiles_per_core + t, 0)),
        ],
        out_specs=pl.BlockSpec((1, SUBLANES, LANES), lambda c, t: (c, 0, 0)),
        compiler_params=pltpu.CompilerParams(
            dimension_semantics=("parallel", "arbitrary"),
            vmem_limit_bytes=32 * 1024 * 1024,
        ),
    )(p2, t2)

    # Tiny final cross-lane reduce + mean (on nc*1024 f32 values) in XLA.
    return jnp.sum(partials) / jnp.float32(n)


def _reference(pred, true, alpha=0.05):
    x = pred.astype(jnp.float32)
    y = true.astype(jnp.float32)
    bce = jnp.maximum(x, 0.0) - x * y + jnp.log1p(jnp.exp(-jnp.abs(x)))
    p = jax.nn.sigmoid(x)
    dx = p - y
    af = 1.0 - jnp.exp((dx - 1.0) / (alpha + 1e-4))
    return jnp.mean(bce * af)


if __name__ == "__main__":
    key = jax.random.PRNGKey(0)
    k1, k2 = jax.random.split(key)

    # NCHW logits + targets (targets in [0,1], like yolov5 objectness/class targets).
    pred = jax.random.normal(k1, (2, 4, 16, 16), dtype=jnp.float32)
    true = jax.random.uniform(k2, (2, 4, 16, 16), dtype=jnp.float32)

    loss = bce_blur_with_logits_loss(pred, true, alpha=0.05)
    loss = jax.block_until_ready(loss)

    ref = _reference(pred, true, alpha=0.05)
    assert jnp.allclose(loss, ref, rtol=1e-5, atol=1e-6), (loss, ref)

    print("KERNEL_OK")
</pallas_src>

<mosaic_0001>
module attributes {stable_mosaic.version = 11 : i64} {
  func.func @_bce_blur_kernel(%arg0: i32, %arg1: i32, %arg2: memref<16x128xf32, #tpu.memory_space<vmem>>, %arg3: memref<16x128xf32, #tpu.memory_space<vmem>>, %arg4: memref<1x8x128xf32, #tpu.memory_space<vmem>>) attributes {dimension_semantics = [#tpu.dimension_semantics<parallel>, #tpu.dimension_semantics<arbitrary>], iteration_bounds = array<i64: 1, 1>, scalar_prefetch = 0 : i64, scratch_operands = 0 : i64, tpu.core_type = #tpu.core_type<tc>, window_params = [{transform_indices = @transform_0, window_bounds = array<i64: 16, 128>}, {transform_indices = @transform_1, window_bounds = array<i64: 16, 128>}, {transform_indices = @transform_2, window_bounds = array<i64: 1, 8, 128>}]} {
    %c0_i32 = arith.constant 0 : i32
    %0 = arith.cmpi eq, %arg1, %c0_i32 : i32
    %1 = arith.extui %0 : i1 to i32
    %c0_i32_0 = arith.constant 0 : i32
    %2 = arith.cmpi ne, %1, %c0_i32_0 : i32
    scf.if %2 {
      %cst_18 = arith.constant 0.000000e+00 : f32
      %36 = vector.broadcast %cst_18 : f32 to vector<1x8x128xf32>
      %c0_19 = arith.constant 0 : index
      %c0_20 = arith.constant 0 : index
      %c0_21 = arith.constant 0 : index
      %37 = vector.load %arg4[%c0_19, %c0_20, %c0_21] : memref<1x8x128xf32, #tpu.memory_space<vmem>>, vector<1x8x128xf32>
      tpu.vector_store %arg4[%c0_19, %c0_20, %c0_21], %36 {strides = array<i32>} : memref<1x8x128xf32, #tpu.memory_space<vmem>>, vector<1x8x128xf32>,
    } else {
    }
    %c0 = arith.constant 0 : index
    %c0_1 = arith.constant 0 : index
    %3 = vector.load %arg2[%c0, %c0_1] : memref<16x128xf32, #tpu.memory_space<vmem>>, vector<16x128xf32>
    %c0_2 = arith.constant 0 : index
    %c0_3 = arith.constant 0 : index
    %4 = vector.load %arg3[%c0_2, %c0_3] : memref<16x128xf32, #tpu.memory_space<vmem>>, vector<16x128xf32>
    %5 = math.absf %3 : vector<16x128xf32>
    %cst = arith.constant 0.000000e+00 : f32
    %6 = vector.broadcast %cst : f32 to vector<16x128xf32>
    %7 = arith.subf %6, %5 : vector<16x128xf32>
    %8 = math.exp %7 : vector<16x128xf32>
    %cst_4 = arith.constant 0.000000e+00 : f32
    %9 = vector.broadcast %cst_4 : f32 to vector<16x128xf32>
    %10 = arith.maximumf %3, %9 : vector<16x128xf32>
    %11 = arith.mulf %3, %4 : vector<16x128xf32>
    %12 = arith.subf %10, %11 : vector<16x128xf32>
    %13 = math.log1p %8 : vector<16x128xf32>
    %14 = arith.addf %12, %13 : vector<16x128xf32>
    %cst_5 = arith.constant 0.000000e+00 : f32
    %15 = vector.broadcast %cst_5 : f32 to vector<16x128xf32>
    %16 = arith.cmpf oge, %3, %15 : vector<16x128xf32>
    %cst_6 = arith.constant 1.000000e+00 : f32
    %17 = vector.broadcast %cst_6 : f32 to vector<16x128xf32>
    %18 = arith.select %16, %17, %8 : vector<16x128xi1>, vector<16x128xf32>
    %cst_7 = arith.constant 1.000000e+00 : f32
    %19 = vector.broadcast %cst_7 : f32 to vector<16x128xf32>
    %20 = arith.addf %19, %8 : vector<16x128xf32>
    %21 = arith.divf %18, %20 : vector<16x128xf32>
    %22 = arith.subf %21, %4 : vector<16x128xf32>
    %cst_8 = arith.constant 1.000000e+00 : f32
    %23 = vector.broadcast %cst_8 : f32 to vector<16x128xf32>
    %24 = arith.subf %22, %23 : vector<16x128xf32>
    %cst_9 = arith.constant 19.9600792 : f32
    %25 = vector.broadcast %cst_9 : f32 to vector<16x128xf32>
    %26 = arith.mulf %24, %25 : vector<16x128xf32>
    %27 = math.exp %26 : vector<16x128xf32>
    %cst_10 = arith.constant 1.000000e+00 : f32
    %28 = vector.broadcast %cst_10 : f32 to vector<16x128xf32>
    %29 = arith.subf %28, %27 : vector<16x128xf32>
    %30 = arith.mulf %14, %29 : vector<16x128xf32>
    %c0_11 = arith.constant 0 : index
    %c0_12 = arith.constant 0 : index
    %c0_13 = arith.constant 0 : index
    %31 = vector.load %arg4[%c0_11, %c0_12, %c0_13] : memref<1x8x128xf32, #tpu.memory_space<vmem>>, vector<1x8x128xf32>
    %32 = vector.shape_cast %30 : vector<16x128xf32> to vector<1x2x8x128xf32>
    %cst_14 = arith.constant dense<0.000000e+00> : vector<1x8x128xf32>
    %33 = vector.multi_reduction <add>, %32, %cst_14 [1] : vector<1x2x8x128xf32> to vector<1x8x128xf32>
    %34 = arith.addf %31, %33 : vector<1x8x128xf32>
    %c0_15 = arith.constant 0 : index
    %c0_16 = arith.constant 0 : index
    %c0_17 = arith.constant 0 : index
    %35 = vector.load %arg4[%c0_15, %c0_16, %c0_17] : memref<1x8x128xf32, #tpu.memory_space<vmem>>, vector<1x8x128xf32>
    tpu.vector_store %arg4[%c0_15, %c0_16, %c0_17], %34 {strides = array<i32>} : memref<1x8x128xf32, #tpu.memory_space<vmem>>, vector<1x8x128xf32>,
    return
  }
  func.func @transform_0(%arg0: i32, %arg1: i32) -> (i32, i32) {
    %c1_i32 = arith.constant 1 : i32
    %0 = arith.muli %arg0, %c1_i32 : i32
    %1 = arith.addi %0, %arg1 : i32
    %c0_i32 = arith.constant 0 : i32
    %c0_i32_0 = arith.constant 0 : i32
    return %1, %c0_i32 : i32, i32
  }
  func.func @transform_1(%arg0: i32, %arg1: i32) -> (i32, i32) {
    %c1_i32 = arith.constant 1 : i32
    %0 = arith.muli %arg0, %c1_i32 : i32
    %1 = arith.addi %0, %arg1 : i32
    %c0_i32 = arith.constant 0 : i32
    %c0_i32_0 = arith.constant 0 : i32
    return %1, %c0_i32 : i32, i32
  }
  func.func @transform_2(%arg0: i32, %arg1: i32) -> (i32, i32, i32) {
    %c0_i32 = arith.constant 0 : i32
    %c0_i32_0 = arith.constant 0 : i32
    %c0_i32_1 = arith.constant 0 : i32
    return %arg0, %c0_i32, %c0_i32_0 : i32, i32, i32
  }
}

</mosaic_0001>

<bundles_post_ra>
// kernel: tpu_custom_call.1
= control target key start
LH: loop header
LB: loop body
LE: loop exit
PB: predicated region body
PF: predicated region fallthrough
CT: control target
= control target key end

     0   :  { %7 = vsyncpa [#allocation3], 0  ;;  %s291_s0 = inlined_call_operand.hbm [shape: f32[16,128], index: 0, kind: input, shape index: {}]   ;;  %s292_s1 = inlined_call_operand.hbm [shape: f32[16,128], index: 1, kind: input, shape index: {}]   ;;  %s293_s2 = inlined_call_operand.hbm [shape: f32[1,8,128], index: 2, kind: output, shape index: {}]  }
   0x1   :  { %8 = vsyncpa [#allocation6], 0 }
   0x2   :  { %9 = vsyncpa [#allocation4], 0  ;;  %s235_s9 = smov [#allocation2]   ;;  %s163_s13 = scalar_lea.hbm %s291_s0, 256 }
   0x3   :  { %s19_s10 = sshll.u32 %s235_s9, 4  ;;  %p164_p0 = scmp.ne.s32.totalorder %s291_s0, %s163_s13  ;;  %s20_s10 = int_to_ptr.vmem [resolvable:$true] %s19_s10 }
   0x4   :  { %p167_p1 = scmp.lt.u32.totalorder %s163_s13, %s291_s0 }
   0x6   :  { %p169_p2 = pnand %p167_p1, %p164_p0 }
   0x8   :  { %172 = shalt.err (!%p169_p2)
}
   0x9   :  { %s173_s18 = scalar_lea.vmem %s20_s10, 256  ;;  %p178_p4 = scmp.lt.s32.totalorder %s20_s10, %s20_s10 }
   0xa   :  { %p174_p3 = scmp.ne.s32.totalorder %s20_s10, %s173_s18  ;;  %p179_p5 = scmp.lt.s32.totalorder %s173_s18, %s173_s18 }
   0xc   :  { %p180_p6 = por %p179_p5, %p178_p4 }
   0xe   :  { %p181_p7 = pnand %p180_p6, %p174_p3 }
  0x10   :  { %184 = shalt.err (!%p181_p7)
}
  0x11   :  { %s236_s19 = smov 128   ;;  %s237_s20 = smov 8  }
  0x12   :  { %25 = dma.hbm_to_vmem [thread:$0]  %s291_s0, 256, %s20_s10, [#allocation3], %s236_s19, %s236_s19, %s237_s20  }
  0x13   :  { %s238_s23 = smov [#allocation5]   ;;  %s185_s27 = scalar_lea.hbm %s292_s1, 256 }
  0x14   :  { %s35_s24 = sshll.u32 %s238_s23, 4  ;;  %p186_p8 = scmp.ne.s32.totalorder %s292_s1, %s185_s27  ;;  %s36_s24 = int_to_ptr.vmem [resolvable:$true] %s35_s24 }
  0x15   :  { %p189_p9 = scmp.lt.u32.totalorder %s185_s27, %s292_s1 }
  0x17   :  { %p191_p10 = pnand %p189_p9, %p186_p8 }
  0x19   :  { %194 = shalt.err (!%p191_p10)
}
  0x1a   :  { %s195_s4 = scalar_lea.vmem %s36_s24, 256  ;;  %p200_p12 = scmp.lt.s32.totalorder %s36_s24, %s36_s24 }
  0x1b   :  { %p196_p11 = scmp.ne.s32.totalorder %s36_s24, %s195_s4  ;;  %p201_p13 = scmp.lt.s32.totalorder %s195_s4, %s195_s4 }
  0x1d   :  { %p202_p0 = por %p201_p13, %p200_p12 }
  0x1f   :  { %p203_p1 = pnand %p202_p0, %p196_p11 }
  0x21   :  { %206 = shalt.err (!%p203_p1)
}
  0x22   :  { %41 = dma.hbm_to_vmem [thread:$0]  %s292_s1, 256, %s36_s24, [#allocation6], %s236_s19, %s236_s19, %s237_s20  }
  0x23   :  { %229 = dma.done.wait [#allocation3], 256  }
  0x24   :  { %230 = vsyncadd [#allocation3], 4294967040 }
  0x25   :  { %231 = dma.done.wait [#allocation6], 256  }
  0x26   :  { %232 = vsyncadd [#allocation6], 4294967040  ;;  %v57_v0 = vld [vmem:[#allocation2] sm:$0xff]  ;;  %v58_v1 = vld [vmem:[#allocation2 + $0x8] sm:$0xff]  ;;  %s239_s1 = smov [#allocation7]  }
  0x27   :  { %v61_v2 = vand.u32 2147483647, %v57_v0  ;;  %v62_v3 = vand.u32 2147483647, %v58_v1  ;;  %vm95_vm0 = vcmp.ge.f32.partialorder %v57_v0, 0.0  ;;  %vm96_vm1 = vcmp.ge.f32.partialorder %v58_v1, 0.0 }
  0x28   :  { %v59_v15 = vld [vmem:[#allocation5] sm:$0xff]  ;;  %v60_v17 = vld [vmem:[#allocation5 + $0x8] sm:$0xff]  ;;  %v69_v36 = vmax.f32 %v57_v0, 0.0  ;;  %v70_v38 = vmax.f32 %v58_v1, 0.0  ;;  %s129_s6 = sshll.u32 %s239_s1, 4  ;;  %s130_s6 = int_to_ptr.vmem [resolvable:$true] %s129_s6 }
  0x29   :  { %v63_v4 = vsub.f32 0.0, %v61_v2  ;;  %v64_v5 = vsub.f32 0.0, %v62_v3  ;;  %v71_v37 = vmul.f32 %v59_v15, %v57_v0  ;;  %v72_v39 = vmul.f32 %v60_v17, %v58_v1  ;;  %s207_s7 = scalar_lea.vmem %s130_s6, 128  ;;  %p212_p3 = scmp.lt.s32.totalorder %s130_s6, %s130_s6 }
  0x2a   :  { %p208_p2 = scmp.ne.s32.totalorder %s130_s6, %s207_s7  ;;  %p213_p4 = scmp.lt.s32.totalorder %s207_s7, %s207_s7 }
  0x2b   :  { %v65_v6 = vmul.f32 1.442695, %v63_v4  ;;  %v67_v7 = vmul.f32 1.442695, %v64_v5  ;;  %v73_v44 = vsub.f32 %v69_v36, %v71_v37  ;;  %v74_v45 = vsub.f32 %v70_v38, %v72_v39 }
  0x2c   :  { %p214_p5 = por %p213_p4, %p212_p3 }
  0x2d   :  { %147 = vpow2.f32 %v65_v6 }
  0x2e   :  { %149 = vpow2.f32 %v67_v7  ;;  %p215_p6 = pnand %p214_p5, %p208_p2 }
  0x37   :  { %v148_v8 = vpop.eup %147 }
  0x38   :  { %v150_v9 = vpop.eup %149  ;;  %v75_v10 = vadd.f32 1.0, %v148_v8  ;;  %v97_v12 = vsel %vm95_vm0, 1.0, %v148_v8  ;;  %v78_v22 = vmul.f32 -0.5, %v148_v8  ;;  %v81_v31 = vand.u32 2147483647, %v148_v8 }
  0x39   :  { %v84_v11 = vadd.f32 1.0, %v150_v9  ;;  %v98_v13 = vsel %vm96_vm1, 1.0, %v150_v9  ;;  %v87_v24 = vmul.f32 -0.5, %v150_v9  ;;  %v90_v35 = vand.u32 2147483647, %v150_v9 }
  0x3a   :  { %151 = vrcp.f32 %v75_v10  ;;  %v79_v28 = vadd.f32 1.0, %v78_v22  ;;  %vm82_vm2 = vcmp.lt.f32.partialorder %v81_v31, 0.0004427343 }
  0x3b   :  { %153 = vrcp.f32 %v84_v11  ;;  %v88_v32 = vadd.f32 1.0, %v87_v24  ;;  %vm91_vm3 = vcmp.lt.f32.partialorder %v90_v35, 0.0004427343 }
  0x3c   :  { %155 = vlog2.f32 %v75_v10  ;;  %v80_v41 = vmul.f32 %v148_v8, %v79_v28 }
  0x3d   :  { %157 = vlog2.f32 %v84_v11  ;;  %v89_v43 = vmul.f32 %v150_v9, %v88_v32 }
  0x44   :  { %v152_v14 = vpop.eup %151 }
  0x45   :  { %v154_v16 = vpop.eup %153  ;;  %v102_v18 = vmul.f32 %v152_v14, %v97_v12 }
  0x46   :  { %v104_v19 = vmul.f32 %v154_v16, %v98_v13  ;;  %v156_v30 = vpop.eup %155 }
  0x47   :  { %v105_v20 = vsub.f32 %v102_v18, %v59_v15  ;;  %v158_v34 = vpop.eup %157  ;;  %v77_v40 = vmul.f32 0.6931472, %v156_v30 }
  0x48   :  { %v106_v21 = vsub.f32 %v104_v19, %v60_v17  ;;  %v86_v42 = vmul.f32 0.6931472, %v158_v34 }
  0x49   :  { %v139_v23 = vadd.f32 -1.0, %v105_v20  ;;  %v83_v46 = vsel %vm82_vm2, %v80_v41, %v77_v40 }
  0x4a   :  { %v140_v25 = vadd.f32 -1.0, %v106_v21  ;;  %v92_v47 = vsel %vm91_vm3, %v89_v43, %v86_v42  ;;  %v93_v48 = vadd.f32 %v83_v46, %v73_v44 }
  0x4b   :  { %v109_v26 = vmul.f32 19.96008, %v139_v23  ;;  %v94_v50 = vadd.f32 %v92_v47, %v74_v45 }
  0x4c   :  { %v110_v27 = vmul.f32 19.96008, %v140_v25 }
  0x4d   :  { %v111_v29 = vmul.f32 1.442695, %v109_v26 }
  0x4e   :  { %v113_v33 = vmul.f32 1.442695, %v110_v27 }
  0x4f   :  { %159 = vpow2.f32 %v111_v29 }
  0x50   :  { %161 = vpow2.f32 %v113_v33 }
  0x59   :  { %v160_v49 = vpop.eup %159 }
  0x5a   :  { %v162_v51 = vpop.eup %161  ;;  %v115_v52 = vsub.f32 1.0, %v160_v49 }
  0x5b   :  { %v116_v53 = vsub.f32 1.0, %v162_v51 }
  0x5c   :  { %v117_v54 = vmul.f32 %v115_v52, %v93_v48 }
  0x5d   :  { %v118_v55 = vmul.f32 %v116_v53, %v94_v50 }
  0x5f   :  { %v120_v56 = vadd.f32 %v118_v55, %v117_v54 }
  0x61   :  { %122 = vst [vmem:[#allocation7] sm:$0xff] %v120_v56 }
  0x62   :  { %218 = shalt.err (!%p215_p6)
}
  0x63   :  { %s219_s10 = scalar_lea.hbm %s293_s2, 128 }
  0x64   :  { %p220_p7 = scmp.ne.s32.totalorder %s293_s2, %s219_s10  ;;  %p223_p8 = scmp.lt.u32.totalorder %s219_s10, %s293_s2 }
  0x66   :  { %p225_p9 = pnand %p223_p8, %p220_p7 }
  0x68   :  { %228 = shalt.err (!%p225_p9)
}
  0x69   :  { %132 = dma.vmem_to_hbm [thread:$0]  %s130_s6, 128, %s293_s2, [#allocation4]  }
  0x6a   :  { %233 = dma.done.wait [#allocation4], 128  }
  0x6b   :  { %234 = vsyncadd [#allocation4], 4294967168 }
  0x6c   :  { %136 = vsyncpa [#allocation3], 1 }
  0x6d   :  { %137 = vsyncpa [#allocation6], 1 }
  0x6e   :  { %138 = vsyncpa [#allocation4], 1 }

</bundles_post_ra>
